<compile_context>
chip_gen: v7x
topology: tpu7x:2x2x1
jax: 0.10.0
libtpu: 0.0.40
codegen_flags: <defaults>
</compile_context>

<pallas_src>
import functools

import jax
import jax.numpy as jnp
from jax.experimental import pallas as pl
from jax.experimental.pallas import tpu as pltpu

ALPHA = 0.25
GAMMA = 2.0
IGNORE_INDEX = 255.0
LANES = 128
SUBLANES = 8
NUM_CORES = 2  # leading "parallel" grid axis; shards across TCs on v7x


def _segloss_partial_kernel(preds_ref, labels_ref, sum_ref, cnt_ref, *,
                            steps, rows, row_tile, needs_bounds_mask):
    c = pl.program_id(0)
    s = pl.program_id(1)

    @pl.when(s == 0)
    def _():
        sum_ref[...] = jnp.zeros_like(sum_ref)
        cnt_ref[...] = jnp.zeros_like(cnt_ref)

    # Cast in-kernel (inputs stream at native width; the cast is VPU work hidden
    # under the input DMA).
    x = preds_ref[...].astype(jnp.float32)
    y = labels_ref[...].astype(jnp.float32)

    mask = y != jnp.float32(IGNORE_INDEX)
    if needs_bounds_mask:
        # Logical (unclamped) block index -> row-bounds mask for boundary /
        # overhang iterations (whose index_map was clamped to the last block).
        logical_block = c * steps + s
        row_start = logical_block * row_tile
        row_ids = jax.lax.broadcasted_iota(jnp.int32, (row_tile, LANES), 0)
        mask = jnp.logical_and(mask, (row_start + row_ids) < rows)

    # Numerically stable BCE-with-logits (matches torch.nn.BCEWithLogitsLoss):
    #   l = max(x, 0) - x*y + log(1 + exp(-|x|))
    bce = jnp.maximum(x, 0.0) - x * y + jnp.log1p(jnp.exp(-jnp.abs(x)))
    bce = jnp.where(mask, bce, 0.0)
    cnt = jnp.where(mask, 1.0, 0.0)

    # VPU-only partial reduction of the (row_tile, 128) tile onto the resident
    # (8, 128) per-core accumulators; cross-lane reduce deferred to the wrapper.
    sum_ref[...] += jnp.sum(bce.reshape(row_tile // SUBLANES, SUBLANES, LANES), axis=0)
    cnt_ref[...] += jnp.sum(cnt.reshape(row_tile // SUBLANES, SUBLANES, LANES), axis=0)


def seg_loss(preds, labels, *, row_tile=4096):
    """preds, labels: same shape (any rank, e.g. NCHW). Returns scalar f32 loss."""
    p = preds.reshape(-1)
    y = labels.reshape(-1)
    n = p.shape[0]

    # Only pad when the element count is not a multiple of the (8,128) layout
    # granularity; the common large-tensor case reshapes with zero copies.
    # TODO(synk): for production, guarantee n % 1024 == 0 upstream to always skip this copy.
    chunk = SUBLANES * LANES
    n_pad = (-n) % chunk
    if n_pad:
        p = jnp.concatenate([p, jnp.zeros((n_pad,), p.dtype)])
        y = jnp.concatenate([y, jnp.full((n_pad,), IGNORE_INDEX, y.dtype)])
    rows = p.shape[0] // LANES  # multiple of 8
    p2 = p.reshape(rows, LANES)
    y2 = y.reshape(rows, LANES)

    # Tile sizing: big enough to amortize per-step pipeline overhead (~0.35 us),
    # small enough that 2 inputs x 2 buffers fits default scoped VMEM everywhere
    # (4096 rows x 128 x 4B = 2 MiB per f32 block -> 8 MiB double-buffered).
    row_tile = max(SUBLANES, (min(row_tile, rows) // SUBLANES) * SUBLANES)
    nblocks = pl.cdiv(rows, row_tile)
    num_cores = min(NUM_CORES, nblocks)       # avoid wasted overhang DMA on tiny inputs
    steps = pl.cdiv(nblocks, num_cores)

    # If the grid tiles the rows exactly, the in-kernel bounds mask compiles away.
    needs_bounds_mask = (rows % row_tile != 0) or (nblocks != num_cores * steps)

    def in_index_map(c, s):
        # Clamp so the pipeline never targets a block past the array end; overhang
        # iterations are fully masked inside the kernel via the logical index.
        return (jnp.minimum(c * steps + s, nblocks - 1), 0)

    kernel = functools.partial(
        _segloss_partial_kernel,
        steps=steps, rows=rows, row_tile=row_tile,
        needs_bounds_mask=needs_bounds_mask)

    sum_parts, cnt_parts = pl.pallas_call(
        kernel,
        out_shape=(
            jax.ShapeDtypeStruct((num_cores, SUBLANES, LANES), jnp.float32),
            jax.ShapeDtypeStruct((num_cores, SUBLANES, LANES), jnp.float32),
        ),
        grid_spec=pltpu.PrefetchScalarGridSpec(
            num_scalar_prefetch=0,
            grid=(num_cores, steps),
            in_specs=[
                pl.BlockSpec((row_tile, LANES), in_index_map),
                pl.BlockSpec((row_tile, LANES), in_index_map),
            ],
            out_specs=(
                pl.BlockSpec((None, SUBLANES, LANES), lambda c, s: (c, 0, 0)),
                pl.BlockSpec((None, SUBLANES, LANES), lambda c, s: (c, 0, 0)),
            ),
        ),
        compiler_params=pltpu.CompilerParams(
            dimension_semantics=("parallel", "arbitrary"),
        ),
    )(p2, y2)

    # Tiny final reduction + focal transform (runs once; explicit square, no pow).
    total_sum = jnp.sum(sum_parts)
    total_cnt = jnp.sum(cnt_parts)  # count == 0 -> NaN, same as PyTorch.
    mean_bce = total_sum / total_cnt
    logpt = -mean_bce
    pt = jnp.exp(logpt)
    one_minus_pt = 1.0 - pt
    return -(one_minus_pt * one_minus_pt) * ALPHA * logpt


def _seg_loss_ref(preds, labels):
    """Pure-JAX reference matching the PyTorch module."""
    p = preds.reshape(-1).astype(jnp.float32)
    y = labels.reshape(-1).astype(jnp.float32)
    mask = y != IGNORE_INDEX
    bce = jnp.maximum(p, 0.0) - p * y + jnp.log1p(jnp.exp(-jnp.abs(p)))
    mean_bce = jnp.sum(jnp.where(mask, bce, 0.0)) / jnp.sum(mask.astype(jnp.float32))
    logpt = -mean_bce
    pt = jnp.exp(logpt)
    one_minus_pt = 1.0 - pt
    return -(one_minus_pt * one_minus_pt) * ALPHA * logpt


def _make_inputs(key, shape):
    k1, k2, k3 = jax.random.split(key, 3)
    preds = jax.random.normal(k1, shape, dtype=jnp.float32)
    labels = jax.random.bernoulli(k2, 0.5, shape).astype(jnp.float32)
    ignore_mask = jax.random.bernoulli(k3, 0.2, shape)
    labels = jnp.where(ignore_mask, jnp.float32(IGNORE_INDEX), labels)
    return preds, labels


if __name__ == "__main__":
    key = jax.random.PRNGKey(0)
    ka, kb = jax.random.split(key)

    # Main case: NCHW (2, 4, 16, 16) -> 2048 elements (exact (8,128) multiple).
    preds, labels = _make_inputs(ka, (2, 4, 16, 16))
    loss = jax.block_until_ready(seg_loss(preds, labels))
    ref = jax.block_until_ready(_seg_loss_ref(preds, labels))
    assert jnp.allclose(loss, ref, rtol=1e-5, atol=1e-6), (loss, ref)

    # Ragged case: exercises the tail-pad + masking path.
    preds2, labels2 = _make_inputs(kb, (2, 3, 15, 17))
    loss2 = jax.block_until_ready(seg_loss(preds2, labels2))
    ref2 = jax.block_until_ready(_seg_loss_ref(preds2, labels2))
    assert jnp.allclose(loss2, ref2, rtol=1e-5, atol=1e-6), (loss2, ref2)

    print("KERNEL_OK")
</pallas_src>

<mosaic_0001>
module attributes {stable_mosaic.version = 11 : i64} {
  func.func @_segloss_partial_kernel(%arg0: i32, %arg1: i32, %arg2: memref<16x128xf32, #tpu.memory_space<vmem>>, %arg3: memref<16x128xf32, #tpu.memory_space<vmem>>, %arg4: memref<1x8x128xf32, #tpu.memory_space<vmem>>, %arg5: memref<1x8x128xf32, #tpu.memory_space<vmem>>) attributes {dimension_semantics = [#tpu.dimension_semantics<parallel>, #tpu.dimension_semantics<arbitrary>], iteration_bounds = array<i64: 1, 1>, scalar_prefetch = 0 : i64, scratch_operands = 0 : i64, tpu.core_type = #tpu.core_type<tc>, window_params = [{transform_indices = @transform_0, window_bounds = array<i64: 16, 128>}, {transform_indices = @transform_1, window_bounds = array<i64: 16, 128>}, {transform_indices = @transform_2, window_bounds = array<i64: 1, 8, 128>}, {transform_indices = @transform_3, window_bounds = array<i64: 1, 8, 128>}]} {
    %c0_i32 = arith.constant 0 : i32
    %0 = arith.cmpi eq, %arg1, %c0_i32 : i32
    %1 = arith.extui %0 : i1 to i32
    %c0_i32_0 = arith.constant 0 : i32
    %2 = arith.cmpi ne, %1, %c0_i32_0 : i32
    scf.if %2 {
      %cst_23 = arith.constant 0.000000e+00 : f32
      %38 = vector.broadcast %cst_23 : f32 to vector<8x128xf32>
      %c0_24 = arith.constant 0 : index
      %c0_25 = arith.constant 0 : index
      %c0_26 = arith.constant 0 : index
      %39 = vector.load %arg4[%c0_24, %c0_25, %c0_26] : memref<1x8x128xf32, #tpu.memory_space<vmem>>, vector<1x8x128xf32>
      %40 = vector.shape_cast %39 : vector<1x8x128xf32> to vector<8x128xf32>
      %41 = vector.shape_cast %38 : vector<8x128xf32> to vector<1x8x128xf32>
      tpu.vector_store %arg4[%c0_24, %c0_25, %c0_26], %41 {strides = array<i32>} : memref<1x8x128xf32, #tpu.memory_space<vmem>>, vector<1x8x128xf32>,
      %cst_27 = arith.constant 0.000000e+00 : f32
      %42 = vector.broadcast %cst_27 : f32 to vector<8x128xf32>
      %c0_28 = arith.constant 0 : index
      %c0_29 = arith.constant 0 : index
      %c0_30 = arith.constant 0 : index
      %43 = vector.load %arg5[%c0_28, %c0_29, %c0_30] : memref<1x8x128xf32, #tpu.memory_space<vmem>>, vector<1x8x128xf32>
      %44 = vector.shape_cast %43 : vector<1x8x128xf32> to vector<8x128xf32>
      %45 = vector.shape_cast %42 : vector<8x128xf32> to vector<1x8x128xf32>
      tpu.vector_store %arg5[%c0_28, %c0_29, %c0_30], %45 {strides = array<i32>} : memref<1x8x128xf32, #tpu.memory_space<vmem>>, vector<1x8x128xf32>,
    } else {
    }
    %c0 = arith.constant 0 : index
    %c0_1 = arith.constant 0 : index
    %3 = vector.load %arg2[%c0, %c0_1] : memref<16x128xf32, #tpu.memory_space<vmem>>, vector<16x128xf32>
    %c0_2 = arith.constant 0 : index
    %c0_3 = arith.constant 0 : index
    %4 = vector.load %arg3[%c0_2, %c0_3] : memref<16x128xf32, #tpu.memory_space<vmem>>, vector<16x128xf32>
    %cst = arith.constant 2.550000e+02 : f32
    %5 = vector.broadcast %cst : f32 to vector<16x128xf32>
    %6 = arith.cmpf one, %4, %5 : vector<16x128xf32>
    %cst_4 = arith.constant 0.000000e+00 : f32
    %7 = vector.broadcast %cst_4 : f32 to vector<16x128xf32>
    %8 = arith.maximumf %3, %7 : vector<16x128xf32>
    %9 = arith.mulf %3, %4 : vector<16x128xf32>
    %10 = arith.subf %8, %9 : vector<16x128xf32>
    %11 = math.absf %3 : vector<16x128xf32>
    %cst_5 = arith.constant 0.000000e+00 : f32
    %12 = vector.broadcast %cst_5 : f32 to vector<16x128xf32>
    %13 = arith.subf %12, %11 : vector<16x128xf32>
    %14 = math.exp %13 : vector<16x128xf32>
    %15 = math.log1p %14 : vector<16x128xf32>
    %16 = arith.addf %10, %15 : vector<16x128xf32>
    %cst_6 = arith.constant 0.000000e+00 : f32
    %17 = vector.broadcast %cst_6 : f32 to vector<16x128xf32>
    %18 = arith.select %6, %16, %17 : vector<16x128xi1>, vector<16x128xf32>
    %cst_7 = arith.constant 1.000000e+00 : f32
    %cst_8 = arith.constant 0.000000e+00 : f32
    %19 = vector.broadcast %cst_7 : f32 to vector<16x128xf32>
    %20 = vector.broadcast %cst_8 : f32 to vector<16x128xf32>
    %21 = arith.select %6, %19, %20 : vector<16x128xi1>, vector<16x128xf32>
    %c0_9 = arith.constant 0 : index
    %c0_10 = arith.constant 0 : index
    %c0_11 = arith.constant 0 : index
    %22 = vector.load %arg4[%c0_9, %c0_10, %c0_11] : memref<1x8x128xf32, #tpu.memory_space<vmem>>, vector<1x8x128xf32>
    %23 = vector.shape_cast %22 : vector<1x8x128xf32> to vector<8x128xf32>
    %24 = vector.shape_cast %18 : vector<16x128xf32> to vector<2x8x128xf32>
    %cst_12 = arith.constant dense<0.000000e+00> : vector<8x128xf32>
    %25 = vector.multi_reduction <add>, %24, %cst_12 [0] : vector<2x8x128xf32> to vector<8x128xf32>
    %26 = arith.addf %23, %25 : vector<8x128xf32>
    %c0_13 = arith.constant 0 : index
    %c0_14 = arith.constant 0 : index
    %c0_15 = arith.constant 0 : index
    %27 = vector.load %arg4[%c0_13, %c0_14, %c0_15] : memref<1x8x128xf32, #tpu.memory_space<vmem>>, vector<1x8x128xf32>
    %28 = vector.shape_cast %27 : vector<1x8x128xf32> to vector<8x128xf32>
    %29 = vector.shape_cast %26 : vector<8x128xf32> to vector<1x8x128xf32>
    tpu.vector_store %arg4[%c0_13, %c0_14, %c0_15], %29 {strides = array<i32>} : memref<1x8x128xf32, #tpu.memory_space<vmem>>, vector<1x8x128xf32>,
    %c0_16 = arith.constant 0 : index
    %c0_17 = arith.constant 0 : index
    %c0_18 = arith.constant 0 : index
    %30 = vector.load %arg5[%c0_16, %c0_17, %c0_18] : memref<1x8x128xf32, #tpu.memory_space<vmem>>, vector<1x8x128xf32>
    %31 = vector.shape_cast %30 : vector<1x8x128xf32> to vector<8x128xf32>
    %32 = vector.shape_cast %21 : vector<16x128xf32> to vector<2x8x128xf32>
    %cst_19 = arith.constant dense<0.000000e+00> : vector<8x128xf32>
    %33 = vector.multi_reduction <add>, %32, %cst_19 [0] : vector<2x8x128xf32> to vector<8x128xf32>
    %34 = arith.addf %31, %33 : vector<8x128xf32>
    %c0_20 = arith.constant 0 : index
    %c0_21 = arith.constant 0 : index
    %c0_22 = arith.constant 0 : index
    %35 = vector.load %arg5[%c0_20, %c0_21, %c0_22] : memref<1x8x128xf32, #tpu.memory_space<vmem>>, vector<1x8x128xf32>
    %36 = vector.shape_cast %35 : vector<1x8x128xf32> to vector<8x128xf32>
    %37 = vector.shape_cast %34 : vector<8x128xf32> to vector<1x8x128xf32>
    tpu.vector_store %arg5[%c0_20, %c0_21, %c0_22], %37 {strides = array<i32>} : memref<1x8x128xf32, #tpu.memory_space<vmem>>, vector<1x8x128xf32>,
    return
  }
  func.func @transform_0(%arg0: i32, %arg1: i32) -> (i32, i32) {
    %c1_i32 = arith.constant 1 : i32
    %0 = arith.muli %arg0, %c1_i32 : i32
    %1 = arith.addi %0, %arg1 : i32
    %c0_i32 = arith.constant 0 : i32
    %2 = arith.minsi %1, %c0_i32 : i32
    %c0_i32_0 = arith.constant 0 : i32
    %c0_i32_1 = arith.constant 0 : i32
    return %2, %c0_i32_0 : i32, i32
  }
  func.func @transform_1(%arg0: i32, %arg1: i32) -> (i32, i32) {
    %c1_i32 = arith.constant 1 : i32
    %0 = arith.muli %arg0, %c1_i32 : i32
    %1 = arith.addi %0, %arg1 : i32
    %c0_i32 = arith.constant 0 : i32
    %2 = arith.minsi %1, %c0_i32 : i32
    %c0_i32_0 = arith.constant 0 : i32
    %c0_i32_1 = arith.constant 0 : i32
    return %2, %c0_i32_0 : i32, i32
  }
  func.func @transform_2(%arg0: i32, %arg1: i32) -> (i32, i32, i32) {
    %c0_i32 = arith.constant 0 : i32
    %c0_i32_0 = arith.constant 0 : i32
    %c0_i32_1 = arith.constant 0 : i32
    return %arg0, %c0_i32, %c0_i32_0 : i32, i32, i32
  }
  func.func @transform_3(%arg0: i32, %arg1: i32) -> (i32, i32, i32) {
    %c0_i32 = arith.constant 0 : i32
    %c0_i32_0 = arith.constant 0 : i32
    %c0_i32_1 = arith.constant 0 : i32
    return %arg0, %c0_i32, %c0_i32_0 : i32, i32, i32
  }
}

</mosaic_0001>

<bundles_post_ra>
// kernel: tpu_custom_call.1
= control target key start
LH: loop header
LB: loop body
LE: loop exit
PB: predicated region body
PF: predicated region fallthrough
CT: control target
= control target key end

     0   :  { %9 = vsyncpa [#allocation3], 0  ;;  %s357_s0 = inlined_call_operand.hbm [shape: f32[16,128], index: 0, kind: input, shape index: {}]   ;;  %s358_s1 = inlined_call_operand.hbm [shape: f32[16,128], index: 1, kind: input, shape index: {}]   ;;  %s359_s2 = inlined_call_operand.hbm [shape: f32[1,8,128], index: 2, kind: output, shape index: {0}]   ;;  %s360_s3 = inlined_call_operand.hbm [shape: f32[1,8,128], index: 3, kind: output, shape index: {1}]  }
   0x1   :  { %10 = vsyncpa [#allocation6], 0 }
   0x2   :  { %11 = vsyncpa [#allocation4], 0 }
   0x3   :  { %12 = vsyncpa [#allocation9], 0  ;;  %s266_s12 = smov [#allocation2]   ;;  %s170_s16 = scalar_lea.hbm %s357_s0, 256 }
   0x4   :  { %s24_s13 = sshll.u32 %s266_s12, 4  ;;  %p171_p0 = scmp.ne.s32.totalorder %s357_s0, %s170_s16  ;;  %s25_s13 = int_to_ptr.vmem [resolvable:$true] %s24_s13 }
   0x5   :  { %p174_p1 = scmp.lt.u32.totalorder %s170_s16, %s357_s0 }
   0x7   :  { %p176_p2 = pnand %p174_p1, %p171_p0 }
   0x9   :  { %179 = shalt.err (!%p176_p2)
}
   0xa   :  { %s180_s21 = scalar_lea.vmem %s25_s13, 256  ;;  %p185_p4 = scmp.lt.s32.totalorder %s25_s13, %s25_s13 }
   0xb   :  { %p181_p3 = scmp.ne.s32.totalorder %s25_s13, %s180_s21  ;;  %p186_p5 = scmp.lt.s32.totalorder %s180_s21, %s180_s21 }
   0xd   :  { %p187_p6 = por %p186_p5, %p185_p4 }
   0xf   :  { %p188_p7 = pnand %p187_p6, %p181_p3 }
  0x11   :  { %191 = shalt.err (!%p188_p7)
}
  0x12   :  { %s267_s22 = smov 128   ;;  %s268_s23 = smov 8  }
  0x13   :  { %30 = dma.hbm_to_vmem [thread:$0]  %s357_s0, 256, %s25_s13, [#allocation3], %s267_s22, %s267_s22, %s268_s23  }
  0x14   :  { %s269_s26 = smov [#allocation5]   ;;  %s192_s30 = scalar_lea.hbm %s358_s1, 256 }
  0x15   :  { %s42_s27 = sshll.u32 %s269_s26, 4  ;;  %p193_p8 = scmp.ne.s32.totalorder %s358_s1, %s192_s30  ;;  %s43_s27 = int_to_ptr.vmem [resolvable:$true] %s42_s27 }
  0x16   :  { %p196_p9 = scmp.lt.u32.totalorder %s192_s30, %s358_s1 }
  0x18   :  { %p198_p10 = pnand %p196_p9, %p193_p8 }
  0x1a   :  { %201 = shalt.err (!%p198_p10)
}
  0x1b   :  { %s202_s8 = scalar_lea.vmem %s43_s27, 256  ;;  %p207_p12 = scmp.lt.s32.totalorder %s43_s27, %s43_s27 }
  0x1c   :  { %p203_p11 = scmp.ne.s32.totalorder %s43_s27, %s202_s8  ;;  %p208_p13 = scmp.lt.s32.totalorder %s202_s8, %s202_s8 }
  0x1e   :  { %p209_p0 = por %p208_p13, %p207_p12 }
  0x20   :  { %p210_p1 = pnand %p209_p0, %p203_p11 }
  0x22   :  { %213 = shalt.err (!%p210_p1)
}
  0x23   :  { %48 = dma.hbm_to_vmem [thread:$0]  %s358_s1, 256, %s43_s27, [#allocation6], %s267_s22, %s267_s22, %s268_s23  }
  0x24   :  { %258 = dma.done.wait [#allocation3], 256  }
  0x25   :  { %259 = vsyncadd [#allocation3], 4294967040 }
  0x26   :  { %260 = dma.done.wait [#allocation6], 256  }
  0x27   :  { %261 = vsyncadd [#allocation6], 4294967040  ;;  %v69_v0 = vld [vmem:[#allocation2] sm:$0xff]  ;;  %v70_v1 = vld [vmem:[#allocation2 + $0x8] sm:$0xff]  ;;  %v270_v6 = vmov 0.0   ;;  %s271_s1 = smov [#allocation8]  }
  0x28   :  { %v317_v2 = vld [vmem:[#allocation5] sm:$0xff]  ;;  %v319_v3 = vld [vmem:[#allocation5 + $0x8] sm:$0xff]  ;;  %v81_v4 = vand.u32 2147483647, %v69_v0  ;;  %v82_v5 = vand.u32 2147483647, %v70_v1 }
  0x29   :  { %vm73_vm0 = vcmp.ne.f32.partialorder %v317_v2, 255.0  ;;  %vm74_vm1 = vcmp.ne.f32.partialorder %v319_v3, 255.0  ;;  %s137_s10 = sshll.u32 %s271_s1, 4  ;;  %s138_s10 = int_to_ptr.vmem [resolvable:$true] %s137_s10 }
  0x2a   :  { %v111_v7 = vsel %vm73_vm0, 1.0, %v270_v6  ;;  %v112_v8 = vsel %vm74_vm1, 1.0, %v270_v6  ;;  %v83_v9 = vsub.f32 0.0, %v81_v4  ;;  %v84_v10 = vsub.f32 0.0, %v82_v5  ;;  %s214_s11 = scalar_lea.vmem %s138_s10, 128  ;;  %p219_p3 = scmp.lt.s32.totalorder %s138_s10, %s138_s10 }
  0x2b   :  { %v118_v11 = vadd.f32 %v112_v8, %v111_v7  ;;  %p215_p2 = scmp.ne.s32.totalorder %s138_s10, %s214_s11  ;;  %p220_p4 = scmp.lt.s32.totalorder %s214_s11, %s214_s11 }
  0x2c   :  { %v85_v12 = vmul.f32 1.442695, %v83_v9  ;;  %v87_v13 = vmul.f32 1.442695, %v84_v10 }
  0x2d   :  { %120 = vst [vmem:[#allocation8] sm:$0xff] %v118_v11  ;;  %p221_p5 = por %p220_p4, %p219_p3 }
  0x2e   :  { %162 = vpow2.f32 %v85_v12 }
  0x2f   :  { %164 = vpow2.f32 %v87_v13  ;;  %p222_p6 = pnand %p221_p5, %p215_p2 }
  0x31   :  { %225 = shalt.err (!%p222_p6)
}
  0x32   :  { %s226_s14 = scalar_lea.hbm %s360_s3, 128 }
  0x33   :  { %p227_p7 = scmp.ne.s32.totalorder %s360_s3, %s226_s14  ;;  %p230_p8 = scmp.lt.u32.totalorder %s226_s14, %s360_s3 }
  0x35   :  { %p232_p9 = pnand %p230_p8, %p227_p7 }
  0x37   :  { %235 = shalt.err (!%p232_p9)
}
  0x38   :  { %140 = dma.vmem_to_hbm [thread:$0]  %s138_s10, 128, %s360_s3, [#allocation9]   ;;  %v163_v14 = vpop.eup %162  ;;  %v75_v21 = vmax.f32 %v69_v0, 0.0  ;;  %v77_v22 = vmul.f32 %v317_v2, %v69_v0  ;;  %v76_v25 = vmax.f32 %v70_v1, 0.0  ;;  %v78_v26 = vmul.f32 %v319_v3, %v70_v1 }
  0x39   :  { %v165_v15 = vpop.eup %164  ;;  %v89_v16 = vadd.f32 1.0, %v163_v14  ;;  %v92_v18 = vmul.f32 -0.5, %v163_v14  ;;  %v95_v23 = vand.u32 2147483647, %v163_v14  ;;  %s272_s3 = smov [#allocation7]  }
  0x3a   :  { %v98_v17 = vadd.f32 1.0, %v165_v15  ;;  %v101_v19 = vmul.f32 -0.5, %v165_v15  ;;  %v104_v27 = vand.u32 2147483647, %v165_v15  ;;  %v79_v30 = vsub.f32 %v75_v21, %v77_v22  ;;  %s127_s21 = sshll.u32 %s272_s3, 4  ;;  %s128_s21 = int_to_ptr.vmem [resolvable:$true] %s127_s21 }
  0x3b   :  { %166 = vlog2.f32 %v89_v16  ;;  %v93_v20 = vadd.f32 1.0, %v92_v18  ;;  %vm96_vm2 = vcmp.lt.f32.partialorder %v95_v23, 0.0004427343  ;;  %v80_v33 = vsub.f32 %v76_v25, %v78_v26  ;;  %s236_s22 = scalar_lea.vmem %s128_s21, 128  ;;  %p241_p11 = scmp.lt.s32.totalorder %s128_s21, %s128_s21 }
  0x3c   :  { %168 = vlog2.f32 %v98_v17  ;;  %v102_v24 = vadd.f32 1.0, %v101_v19  ;;  %vm105_vm3 = vcmp.lt.f32.partialorder %v104_v27, 0.0004427343  ;;  %p237_p10 = scmp.ne.s32.totalorder %s128_s21, %s236_s22  ;;  %p242_p12 = scmp.lt.s32.totalorder %s236_s22, %s236_s22 }
  0x3d   :  { %v94_v28 = vmul.f32 %v163_v14, %v93_v20 }
  0x3e   :  { %v103_v31 = vmul.f32 %v165_v15, %v102_v24  ;;  %p243_p13 = por %p242_p12, %p241_p11 }
  0x40   :  { %p244_p0 = pnand %p243_p13, %p237_p10 }
  0x45   :  { %v167_v29 = vpop.eup %166 }
  0x46   :  { %v169_v32 = vpop.eup %168  ;;  %v91_v34 = vmul.f32 0.6931472, %v167_v29 }
  0x47   :  { %v100_v35 = vmul.f32 0.6931472, %v169_v32 }
  0x48   :  { %v97_v36 = vsel %vm96_vm2, %v94_v28, %v91_v34 }
  0x49   :  { %v106_v37 = vsel %vm105_vm3, %v103_v31, %v100_v35  ;;  %v107_v38 = vadd.f32 %v97_v36, %v79_v30 }
  0x4a   :  { %v108_v39 = vadd.f32 %v106_v37, %v80_v33 }
  0x4b   :  { %v109_v40 = vsel %vm73_vm0, %v107_v38, 0.0 }
  0x4c   :  { %v110_v41 = vsel %vm74_vm1, %v108_v39, 0.0 }
  0x4d   :  { %v114_v42 = vadd.f32 %v110_v41, %v109_v40 }
  0x4f   :  { %116 = vst [vmem:[#allocation7] sm:$0xff] %v114_v42 }
  0x50   :  { %247 = shalt.err (!%p244_p0)
}
  0x51   :  { %s248_s25 = scalar_lea.hbm %s359_s2, 128 }
  0x52   :  { %p249_p1 = scmp.ne.s32.totalorder %s359_s2, %s248_s25  ;;  %p252_p2 = scmp.lt.u32.totalorder %s248_s25, %s359_s2 }
  0x54   :  { %p254_p3 = pnand %p252_p2, %p249_p1 }
  0x56   :  { %257 = shalt.err (!%p254_p3)
}
  0x57   :  { %130 = dma.vmem_to_hbm [thread:$0]  %s128_s21, 128, %s359_s2, [#allocation4]  }
  0x58   :  { %262 = dma.done.wait [#allocation4], 128  }
  0x59   :  { %263 = vsyncadd [#allocation4], 4294967168 }
  0x5a   :  { %264 = dma.done.wait [#allocation9], 128  }
  0x5b   :  { %265 = vsyncadd [#allocation9], 4294967168 }
  0x5c   :  { %147 = vsyncpa [#allocation3], 1 }
  0x5d   :  { %148 = vsyncpa [#allocation6], 1 }
  0x5e   :  { %149 = vsyncpa [#allocation4], 1 }
  0x5f   :  { %150 = vsyncpa [#allocation9], 1 }

</bundles_post_ra>
